<compile_context>
chip_gen: v7x
topology: tpu7x:2x2x1
jax: 0.10.0
libtpu: 0.0.40
codegen_flags: <defaults>
</compile_context>

<pallas_src>
import jax
import jax.numpy as jnp
from jax import lax
from jax.experimental import pallas as pl
from jax.experimental.pallas import tpu as pltpu


def _round_up(n, m):
    return ((n + m - 1) // m) * m


def _vmem_capacity_bytes():
    try:
        return int(pltpu.get_tpu_info().vmem_capacity_bytes)
    except Exception:
        return 64 << 20  # conservative fallback (v7x per-TensorCore VMEM)


def _mlp_kernel(x_ref, w1_ref, b1_ref, w2_ref, b2_ref, o_ref, h_acc_ref):
    """One (batch-tile, K-tile) grid step of sigmoid(relu(x @ W1^T + b1) @ W2^T + b2).

    Batch stays on the lane axis throughout:
      x:     (TB, TK)  compute dtype   (batch tile, K slice of input features)
      w1:    (H,  TK)  compute dtype   (PyTorch layout slice, resident across batch)
      b1:    (H,  1)   f32
      w2:    (O,  H)   compute dtype   (resident)
      b2:    (O,  1)   f32
      o:     (O,  TB)  f32             (transposed, lane-dense output slab)
      h_acc: (H,  TB)  f32 scratch     (hidden pre-activation accumulator over K)
    """
    k = pl.program_id(1)

    @pl.when(k == 0)
    def _():
        h_acc_ref[...] = jnp.zeros_like(h_acc_ref)

    # Partial h^T += W1[:, k-slice] @ x[:, k-slice]^T -> (H, TB) on the MXU.
    h_acc_ref[...] += lax.dot_general(
        w1_ref[...], x_ref[...], (((1,), (1,)), ((), ())),
        preferred_element_type=jnp.float32)

    @pl.when(k == pl.num_programs(1) - 1)
    def _():
        # Bias + ReLU on the lane-dense (H, TB) layout.
        h_t = jnp.maximum(h_acc_ref[...] + b1_ref[...], 0.0)
        # logits^T = W2 @ h^T -> (O, TB): plain NN matmul, lane-dense store.
        logits_t = lax.dot_general(
            w2_ref[...], h_t.astype(w2_ref.dtype), (((1,), (0,)), ((), ())),
            preferred_element_type=jnp.float32)
        logits_t = logits_t + b2_ref[...]
        # Exact sigmoid via tanh (single EUP op): sigmoid(z) = 0.5*tanh(0.5*z)+0.5.
        o_ref[...] = (0.5 * jnp.tanh(0.5 * logits_t) + 0.5).astype(o_ref.dtype)


def binary_classifier_forward(x, w1, b1, w2, b2, *,
                              compute_dtype=jnp.bfloat16,
                              batch_tile=None,
                              k_tile=None,
                              vmem_budget_bytes=None,
                              min_pallas_bytes=1 << 20,
                              force_pallas=False):
    """
    x:  (B, F) float32
    w1: (H, F) float32  (PyTorch nn.Linear weight layout)
    b1: (H,)   float32
    w2: (O, H) float32
    b2: (O,)   float32
    returns: (B, O) float32 sigmoid outputs

    compute_dtype: matmul operand dtype (bf16 default; accumulation stays f32).
    """
    B, F = x.shape
    H, F2 = w1.shape
    O, H2 = w2.shape
    assert F2 == F and H2 == H

    ws = jnp.dtype(compute_dtype).itemsize

    # ---- tiny-problem fast path: kernel launch dwarfs the math below ~1 MiB ----
    if (not force_pallas and batch_tile is None and k_tile is None
            and B * F * ws < min_pallas_bytes):
        h = jnp.maximum(x @ w1.T + b1, 0.0)
        return jax.nn.sigmoid(h @ w2.T + b2)

    # ---- generation-aware VMEM budget (128 MiB v5e/v6e, 64 MiB v7x) ----
    cap = _vmem_capacity_bytes()
    if vmem_budget_bytes is None:
        vmem_budget_bytes = int(0.70 * cap)
    vmem_budget_bytes = int(min(vmem_budget_bytes, 0.85 * cap))

    # ---- K (input_features) tiling so W1 always fits VMEM (matters on v7x) ----
    def w1_block_bytes(tk):
        return 2 * H * _round_up(tk, 128) * ws       # double-buffered w1 tile

    fixed_small = 2 * _round_up(O, 8) * _round_up(H, 128) * ws + (4 << 10)  # w2 + biases
    if k_tile is not None:
        TK = int(k_tile)
    elif w1_block_bytes(F) + fixed_small <= vmem_budget_bytes // 2:
        TK = F                                       # whole F in a single slice
    else:
        TK = 128
        while (2 * TK < F
               and w1_block_bytes(2 * TK) + fixed_small <= vmem_budget_bytes // 2):
            TK *= 2
    if TK >= F:
        TK, grid_k, F_pad = F, 1, F
    else:
        TK = max(128, (TK // 128) * 128)
        grid_k = pl.cdiv(F, TK)
        F_pad = TK * grid_k

    # ---- batch-tile selection against the remaining VMEM budget ----
    # Per-row cost: lane-padded, double-buffered x tile + double-buffered (O, TB)
    # output slab + the f32 (H, TB) hidden accumulator scratch.
    per_row = (2 * _round_up(TK, 128) * ws
               + 2 * _round_up(O, 8) * 4
               + _round_up(H, 8) * 4)
    resident = w1_block_bytes(TK) + fixed_small
    rows_fit = max(8, (vmem_budget_bytes - resident) // max(per_row, 1))

    if batch_tile is not None:
        TB = max(8, int(batch_tile))
        if B > TB:
            TB = max(128, (TB // 128) * 128)
        grid_b = pl.cdiv(B, TB)
    elif B <= rows_fit and B < 1024:
        TB = _round_up(max(B, 8), 8)                 # single tile (full-dim block)
        grid_b = 1
    else:
        # Fat (>=512-row where possible) tiles to amortize per-step overhead;
        # >=2 tiles for large B so v7x's two TensorCores both get work.
        target = min(rows_fit, 4096, _round_up(pl.cdiv(B, 2), 128))
        TB = max(128, (target // 128) * 128)
        if rows_fit >= 512 and B >= 512:
            TB = max(TB, 512)
        grid_b = pl.cdiv(B, TB)
    B_pad = TB * grid_b

    # Cast matmul operands once in the wrapper; biases stay f32.
    # TODO(synk): accept x pre-transposed as (F, B) (batch on lanes) when F <= 32 and
    # the transpose can be absorbed upstream — cuts x HBM traffic up to ~8x.
    x_c = x.astype(compute_dtype)
    w1_c = w1.astype(compute_dtype)
    w2_c = w2.astype(compute_dtype)
    b1_2d = b1.reshape(H, 1).astype(jnp.float32)
    b2_2d = b2.reshape(O, 1).astype(jnp.float32)

    if B_pad != B or F_pad != F:
        x_c = jnp.pad(x_c, ((0, B_pad - B), (0, F_pad - F)))
    if F_pad != F:
        w1_c = jnp.pad(w1_c, ((0, 0), (0, F_pad - F)))

    vmem_est = resident + TB * per_row + (1 << 20)
    vmem_limit = int(min(max(2 * vmem_est, 32 << 20), 0.9 * cap))

    cost = pl.CostEstimate(
        flops=int(2 * B_pad * F_pad * H + 2 * B_pad * H * O),
        transcendentals=int(B_pad * O),
        bytes_accessed=int(B_pad * F_pad * ws + grid_b * F_pad * H * ws
                           + H * O * ws + (H + O) * 4 + B_pad * O * 4),
    )

    out_t = pl.pallas_call(
        _mlp_kernel,
        out_shape=jax.ShapeDtypeStruct((O, B_pad), jnp.float32),
        grid=(grid_b, grid_k),
        in_specs=[
            pl.BlockSpec((TB, TK), lambda i, k: (i, k)),   # x: batch- and K-tiled
            pl.BlockSpec((H, TK), lambda i, k: (0, k)),    # w1: resident across batch
            pl.BlockSpec((H, 1), lambda i, k: (0, 0)),     # b1: resident
            pl.BlockSpec((O, H), lambda i, k: (0, 0)),     # w2: resident
            pl.BlockSpec((O, 1), lambda i, k: (0, 0)),     # b2: resident
        ],
        out_specs=pl.BlockSpec((O, TB), lambda i, k: (0, i)),   # lane-dense slab
        scratch_shapes=[pltpu.VMEM((H, TB), jnp.float32)],      # h^T accumulator
        compiler_params=pltpu.CompilerParams(
            dimension_semantics=("parallel", "arbitrary"),
            vmem_limit_bytes=vmem_limit),
        cost_estimate=cost,
    )(x_c, w1_c, b1_2d, w2_c, b2_2d)

    # Undo the transposed, padded output layout: (O, B_pad) -> (B, O).
    return jnp.transpose(out_t[:, :B])


def _init_linear(key, out_features, in_features):
    """Deterministic nn.Linear-style init: U(-1/sqrt(fan_in), 1/sqrt(fan_in))."""
    kw, kb = jax.random.split(key)
    bound = 1.0 / jnp.sqrt(jnp.float32(in_features))
    w = jax.random.uniform(kw, (out_features, in_features), jnp.float32,
                           minval=-bound, maxval=bound)
    b = jax.random.uniform(kb, (out_features,), jnp.float32,
                           minval=-bound, maxval=bound)
    return w, b


def _reference(x, w1, b1, w2, b2):
    h = jnp.maximum(x @ w1.T + b1, 0.0)
    return jax.nn.sigmoid(h @ w2.T + b2)


if __name__ == "__main__":
    batch_size = 8
    input_features = 16
    hidden_dim = 32
    output_dim = 1

    key = jax.random.PRNGKey(0)
    kx, k1, k2, kx2, kx3 = jax.random.split(key, 5)

    x = jax.random.normal(kx, (batch_size, input_features), jnp.float32)
    w1, b1 = _init_linear(k1, hidden_dim, input_features)
    w2, b2 = _init_linear(k2, output_dim, hidden_dim)
    ref = _reference(x, w1, b1, w2, b2)

    # 1) f32 operands, single-tile grid (force the Pallas path past the tiny-problem
    #    fast path).  Exact sigmoid => tight tolerance.
    out = binary_classifier_forward(x, w1, b1, w2, b2,
                                    compute_dtype=jnp.float32, force_pallas=True)
    out = jax.block_until_ready(out)
    assert out.shape == (batch_size, output_dim)
    assert jnp.allclose(out, ref, atol=1e-4, rtol=1e-4)

    # 2) Default bf16 operands (MXU-native), f32 accumulation.
    out_bf16 = binary_classifier_forward(x, w1, b1, w2, b2, force_pallas=True)
    out_bf16 = jax.block_until_ready(out_bf16)
    assert jnp.allclose(out_bf16, ref, atol=2e-2, rtol=2e-2)

    # 3) Multi-batch-tile path: the heuristic splits B=1200 into two fat "parallel"
    #    tiles (>=512 rows), exercising padding and the lane-dense (O, TB) slab.
    big_batch = 1200
    x_big = jax.random.normal(kx2, (big_batch, input_features), jnp.float32)
    ref_big = _reference(x_big, w1, b1, w2, b2)
    out_big = binary_classifier_forward(x_big, w1, b1, w2, b2,
                                        compute_dtype=jnp.float32)
    out_big = jax.block_until_ready(out_big)
    assert out_big.shape == (big_batch, output_dim)
    assert jnp.allclose(out_big, ref_big, atol=1e-4, rtol=1e-4)

    # 4) K-tiled accumulator path (input_features split over the "arbitrary" axis),
    #    as required for large F*H on v7x's 64 MiB VMEM.
    wide_features = 256
    xw = jax.random.normal(kx3, (batch_size, wide_features), jnp.float32)
    w1w, b1w = _init_linear(k1, hidden_dim, wide_features)
    refw = _reference(xw, w1w, b1w, w2, b2)
    outw = binary_classifier_forward(xw, w1w, b1w, w2, b2,
                                     compute_dtype=jnp.float32,
                                     k_tile=128, force_pallas=True)
    outw = jax.block_until_ready(outw)
    assert jnp.allclose(outw, refw, atol=1e-4, rtol=1e-4)

    # 5) Tiny-problem fast path (plain XLA, no pallas_call) stays correct.
    out_fast = binary_classifier_forward(x, w1, b1, w2, b2,
                                         compute_dtype=jnp.float32)
    assert jnp.allclose(jax.block_until_ready(out_fast), ref, atol=1e-5, rtol=1e-5)

    print("KERNEL_OK")
</pallas_src>

<mosaic_0001>
module attributes {stable_mosaic.version = 11 : i64} {
  func.func @_mlp_kernel(%arg0: i32, %arg1: i32, %arg2: memref<8x16xf32, #tpu.memory_space<vmem>>, %arg3: memref<32x16xf32, #tpu.memory_space<vmem>>, %arg4: memref<32x1xf32, #tpu.memory_space<vmem>>, %arg5: memref<1x32xf32, #tpu.memory_space<vmem>>, %arg6: memref<1x1xf32, #tpu.memory_space<vmem>>, %arg7: memref<1x8xf32, #tpu.memory_space<vmem>>, %arg8: memref<32x8xf32, #tpu.memory_space<vmem>>) attributes {dimension_semantics = [#tpu.dimension_semantics<parallel>, #tpu.dimension_semantics<arbitrary>], iteration_bounds = array<i64: 1, 1>, scalar_prefetch = 0 : i64, scratch_operands = 1 : i64, tpu.core_type = #tpu.core_type<tc>, window_params = [{transform_indices = @transform_0, window_bounds = array<i64: 8, 16>}, {transform_indices = @transform_1, window_bounds = array<i64: 32, 16>}, {pipeline_mode = #tpu.pipeline_mode<synchronous>, transform_indices = @transform_2, window_bounds = array<i64: 32, 1>}, {pipeline_mode = #tpu.pipeline_mode<synchronous>, transform_indices = @transform_3, window_bounds = array<i64: 1, 32>}, {pipeline_mode = #tpu.pipeline_mode<synchronous>, transform_indices = @transform_4, window_bounds = array<i64: 1, 1>}, {transform_indices = @transform_5, window_bounds = array<i64: 1, 8>}]} {
    %c0_i32 = arith.constant 0 : i32
    %0 = arith.cmpi eq, %arg1, %c0_i32 : i32
    %1 = arith.extui %0 : i1 to i32
    %c0_i32_0 = arith.constant 0 : i32
    %2 = arith.cmpi ne, %1, %c0_i32_0 : i32
    scf.if %2 {
      %cst_10 = arith.constant 0.000000e+00 : f32
      %12 = vector.broadcast %cst_10 : f32 to vector<32x8xf32>
      %c0_11 = arith.constant 0 : index
      %c0_12 = arith.constant 0 : index
      %13 = vector.load %arg8[%c0_11, %c0_12] : memref<32x8xf32, #tpu.memory_space<vmem>>, vector<32x8xf32>
      tpu.vector_store %arg8[%c0_11, %c0_12], %12 {strides = array<i32>} : memref<32x8xf32, #tpu.memory_space<vmem>>, vector<32x8xf32>,
    } else {
    }
    %c0 = arith.constant 0 : index
    %c0_1 = arith.constant 0 : index
    %3 = vector.load %arg8[%c0, %c0_1] : memref<32x8xf32, #tpu.memory_space<vmem>>, vector<32x8xf32>
    %c0_2 = arith.constant 0 : index
    %c0_3 = arith.constant 0 : index
    %4 = vector.load %arg3[%c0_2, %c0_3] : memref<32x16xf32, #tpu.memory_space<vmem>>, vector<32x16xf32>
    %c0_4 = arith.constant 0 : index
    %c0_5 = arith.constant 0 : index
    %5 = vector.load %arg2[%c0_4, %c0_5] : memref<8x16xf32, #tpu.memory_space<vmem>>, vector<8x16xf32>
    %cst = arith.constant dense<0.000000e+00> : vector<32x8xf32>
    %6 = tpu.matmul %4, %5, %cst {dimension_numbers = #tpu.dot_dimension_numbers<[1], [1], [0], [0], [0, 0, 1, 0], [], []>} : vector<32x16xf32>, vector<8x16xf32>, vector<32x8xf32> -> vector<32x8xf32>
    %7 = arith.addf %3, %6 : vector<32x8xf32>
    %c0_6 = arith.constant 0 : index
    %c0_7 = arith.constant 0 : index
    %8 = vector.load %arg8[%c0_6, %c0_7] : memref<32x8xf32, #tpu.memory_space<vmem>>, vector<32x8xf32>
    tpu.vector_store %arg8[%c0_6, %c0_7], %7 {strides = array<i32>} : memref<32x8xf32, #tpu.memory_space<vmem>>, vector<32x8xf32>,
    %c0_i32_8 = arith.constant 0 : i32
    %9 = arith.cmpi eq, %arg1, %c0_i32_8 : i32
    %10 = arith.extui %9 : i1 to i32
    %c0_i32_9 = arith.constant 0 : i32
    %11 = arith.cmpi ne, %10, %c0_i32_9 : i32
    scf.if %11 {
      %c0_10 = arith.constant 0 : index
      %c0_11 = arith.constant 0 : index
      %12 = vector.load %arg8[%c0_10, %c0_11] : memref<32x8xf32, #tpu.memory_space<vmem>>, vector<32x8xf32>
      %c0_12 = arith.constant 0 : index
      %c0_13 = arith.constant 0 : index
      %13 = vector.load %arg4[%c0_12, %c0_13] : memref<32x1xf32, #tpu.memory_space<vmem>>, vector<32x1xf32>
      %14 = vector.broadcast %13 : vector<32x1xf32> to vector<32x8xf32>
      %15 = arith.addf %12, %14 : vector<32x8xf32>
      %cst_14 = arith.constant 0.000000e+00 : f32
      %16 = vector.broadcast %cst_14 : f32 to vector<32x8xf32>
      %17 = arith.maximumf %15, %16 : vector<32x8xf32>
      %c0_15 = arith.constant 0 : index
      %c0_16 = arith.constant 0 : index
      %18 = vector.load %arg5[%c0_15, %c0_16] : memref<1x32xf32, #tpu.memory_space<vmem>>, vector<1x32xf32>
      %cst_17 = arith.constant dense<0.000000e+00> : vector<1x8xf32>
      %19 = tpu.matmul %18, %17, %cst_17 {dimension_numbers = #tpu.dot_dimension_numbers<[1], [0], [0], [1], [0, 0, 1, 1], [], []>} : vector<1x32xf32>, vector<32x8xf32>, vector<1x8xf32> -> vector<1x8xf32>
      %c0_18 = arith.constant 0 : index
      %c0_19 = arith.constant 0 : index
      %20 = vector.load %arg6[%c0_18, %c0_19] : memref<1x1xf32, #tpu.memory_space<vmem>>, vector<1x1xf32>
      %21 = vector.broadcast %20 : vector<1x1xf32> to vector<1x8xf32>
      %22 = arith.addf %19, %21 : vector<1x8xf32>
      %cst_20 = arith.constant 5.000000e-01 : f32
      %23 = vector.broadcast %cst_20 : f32 to vector<1x8xf32>
      %24 = arith.mulf %23, %22 : vector<1x8xf32>
      %25 = math.tanh %24 : vector<1x8xf32>
      %cst_21 = arith.constant 5.000000e-01 : f32
      %26 = vector.broadcast %cst_21 : f32 to vector<1x8xf32>
      %27 = arith.mulf %26, %25 : vector<1x8xf32>
      %cst_22 = arith.constant 5.000000e-01 : f32
      %28 = vector.broadcast %cst_22 : f32 to vector<1x8xf32>
      %29 = arith.addf %27, %28 : vector<1x8xf32>
      %c0_23 = arith.constant 0 : index
      %c0_24 = arith.constant 0 : index
      %30 = vector.load %arg7[%c0_23, %c0_24] : memref<1x8xf32, #tpu.memory_space<vmem>>, vector<1x8xf32>
      tpu.vector_store %arg7[%c0_23, %c0_24], %29 {strides = array<i32>} : memref<1x8xf32, #tpu.memory_space<vmem>>, vector<1x8xf32>,
    } else {
    }
    return
  }
  func.func @transform_0(%arg0: i32, %arg1: i32) -> (i32, i32) {
    %c0_i32 = arith.constant 0 : i32
    return %arg0, %arg1 : i32, i32
  }
  func.func @transform_1(%arg0: i32, %arg1: i32) -> (i32, i32) {
    %c0_i32 = arith.constant 0 : i32
    %c0_i32_0 = arith.constant 0 : i32
    return %c0_i32, %arg1 : i32, i32
  }
  func.func @transform_2(%arg0: i32, %arg1: i32) -> (i32, i32) {
    %c0_i32 = arith.constant 0 : i32
    %c0_i32_0 = arith.constant 0 : i32
    %c0_i32_1 = arith.constant 0 : i32
    return %c0_i32, %c0_i32_0 : i32, i32
  }
  func.func @transform_3(%arg0: i32, %arg1: i32) -> (i32, i32) {
    %c0_i32 = arith.constant 0 : i32
    %c0_i32_0 = arith.constant 0 : i32
    %c0_i32_1 = arith.constant 0 : i32
    return %c0_i32, %c0_i32_0 : i32, i32
  }
  func.func @transform_4(%arg0: i32, %arg1: i32) -> (i32, i32) {
    %c0_i32 = arith.constant 0 : i32
    %c0_i32_0 = arith.constant 0 : i32
    %c0_i32_1 = arith.constant 0 : i32
    return %c0_i32, %c0_i32_0 : i32, i32
  }
  func.func @transform_5(%arg0: i32, %arg1: i32) -> (i32, i32) {
    %c0_i32 = arith.constant 0 : i32
    %c0_i32_0 = arith.constant 0 : i32
    return %c0_i32, %arg0 : i32, i32
  }
}

</mosaic_0001>

<bundles_post_ra>
// kernel: tpu_custom_call.1
= control target key start
LH: loop header
LB: loop body
LE: loop exit
PB: predicated region body
PF: predicated region fallthrough
CT: control target
= control target key end

     0   :  { %s463_s0 = inlined_call_operand.vmem [shape: f32[8,16], index: 0, kind: input, shape index: {}]   ;;  %s464_s1 = inlined_call_operand.vmem [shape: f32[32,16], index: 1, kind: input, shape index: {}]   ;;  %s465_s2 = inlined_call_operand.vmem [shape: f32[32,1], index: 2, kind: input, shape index: {}]   ;;  %s466_s3 = inlined_call_operand.vmem [shape: f32[1,32], index: 3, kind: input, shape index: {}]   ;;  %s467_s4 = inlined_call_operand.<no memory space> [shape: f32[1,1], index: 4, kind: input, shape index: {}]   ;;  %s468_s5 = inlined_call_operand.hbm [shape: f32[1,8], index: 5, kind: output, shape index: {}]  }
   0x1   :  { %v10_v0 = vstv %s467_s4 }
   0x2   :  { %11 = vst [vmem:[#allocation3] sm:$0x1] %v10_v0 }
   0x3   :  { %v40_v1 = vld [vmem:[%s463_s0] sm:$0xff]  ;;  %vm41_vm0 = vcmask 130048   ;;  %v37_v4 = vld [vmem:[%s464_s1 + $0x8] sm:$0xff]  ;;  %v369_v5 = vmov 0   ;;  %v160_v6 = vld [vmem:[%s465_s2 + $0x10] sm:$0xff]  ;;  %vm27_vm1 = vcmask 64512  }
   0x4   :  { %v36_v2 = vld [vmem:[%s464_s1] sm:$0xff]  ;;  %311 = vmatprep.subr.msk.mxu0 %vm41_vm0, %v40_v1  ;;  %341 = vset.pattern.permute.xlu0 %v369_v5  ;;  %v38_v7 = vld [vmem:[%s464_s1 + $0x10] sm:$0xff]  ;;  %v370_v8 = vmov 0.0  }
   0x5   :  { %313 = vmatprep.mubr.msk.f32.mxu0 %vm41_vm0, %v36_v2  ;;  %v158_v3 = vld [vmem:[%s465_s2] sm:$0xff]  ;;  %312 = vmatpush3.xpose.msk.msra.mxu0 %vm41_vm0, %v40_v1  ;;  %29 = vst.msk [vmem:[#allocation2 + $0x8] sm:$0xff] %vm27_vm1, %v370_v8  ;;  %28 = vst.msk [vmem:[#allocation2] sm:$0xff] %vm27_vm1, %v370_v8 }
   0x6   :  { %164 = vperm.xlu0 %341, %v158_v3   ;;  %342 = vset.pattern.permute.xlu1 %v369_v5  ;;  %30 = vst.msk [vmem:[#allocation2 + $0x10] sm:$0xff] %vm27_vm1, %v370_v8  ;;  %31 = vst.msk [vmem:[#allocation2 + $0x18] sm:$0xff] %vm27_vm1, %v370_v8 }
   0x7   :  { %12 = vsyncpa [#allocation5], 0  ;;  %v159_v9 = vld [vmem:[%s465_s2 + $0x8] sm:$0xff]  ;;  %174 = vperm.xlu1 %342, %v160_v6   ;;  %v161_v10 = vld [vmem:[%s465_s2 + $0x18] sm:$0xff]  ;;  %v371_v13 = vmov 0.0|0.0   ;;  %vm372_vm2 = vmmov 0   ;;  %v197_v45 = vlaneseq }
   0x8   :  { %314 = vmatmul.mubr.msk.f32.vlgmr.msra.gmra.mrb[0].mxu0 %vm41_vm0, %v37_v4  ;;  %v39_v11 = vld [vmem:[%s464_s1 + $0x18] sm:$0xff]  ;;  %330 = vmatprep.subr.bf16.mxu1 %v371_v13  ;;  %v190_v44 = vld [vmem:[%s466_s3] sm:$0x1]  ;;  %vm201_vm3 = vcmask 261120   ;;  %s373_s11 = smov [#allocation4]   ;;  %vm279_vm4 = vcmask 57344  }
   0x9   :  { %316 = vmatprep.mubr.msk.f32.mxu0 %vm41_vm0, %v38_v7  ;;  %v191_v12 = vld [vmem:[#allocation3] sm:$0x1]  ;;  %327 = vmatprep.mubr.msk.f32.mxu1 %vm372_vm2, %v370_v8  ;;  %v198_v46 = vshrl.u32 %v197_v45, 7  ;;  %s287_s12 = sshll.u32 %s373_s11, 4  ;;  %s288_s12 = int_to_ptr.vmem [resolvable:$true] %s287_s12 }
   0xa   :  { %169 = vperm.xlu0 %341, %v159_v9   ;;  %s345_s3 = scalar_lea.vmem %s288_s12, 16  ;;  %s349_s13 = scalar_lea.vmem %s288_s12, 32 }
   0xb   :  { %179 = vperm.xlu1 %342, %v161_v10   ;;  %v199_v47 = vsub.s32 0, %v198_v46  ;;  %p346_p0 = scmp.ne.s32.totalorder %s288_s12, %s345_s3  ;;  %p350_p1 = scmp.lt.s32.totalorder %s288_s12, %s288_s12 }
   0xc   :  { %317 = vmatmul.mubr.msk.f32.gmra.mrb[2].mxu0 %vm41_vm0, %v39_v11  ;;  %v33_v14 = vld [vmem:[#allocation2 + $0x8] sm:$0xff]  ;;  %v32_v15 = vld [vmem:[#allocation2] sm:$0xff]  ;;  %p351_p2 = scmp.lt.s32.totalorder %s349_s13, %s345_s3 }
   0xd   :  { %v35_v20 = vld [vmem:[#allocation2 + $0x18] sm:$0xff]  ;;  %v34_v21 = vld [vmem:[#allocation2 + $0x10] sm:$0xff] }
   0xe   :  { %194 = vperm.xlu0 %341, %v191_v12   ;;  %p352_p3 = por %p351_p2, %p350_p1 }
  0x10   :  { %p353_p4 = pnand %p352_p3, %p346_p0 }
  0x85   :  { %v165_v22 = vpop.permute.xlu0 %164 }
  0x86   :  { %v175_v27 = vpop.permute.xlu1 %174 }
  0x89   :  { %v170_v28 = vpop.permute.xlu0 %169 }
  0x8a   :  { %v180_v34 = vpop.permute.xlu1 %179 }
  0x8d   :  { %v195_v48 = vpop.permute.xlu0 %194 }
  0x8e   :  { %v200_v49 = vrot.slane %v195_v48, %v199_v47 }
  0xdb   :  { %v315_v16 = vpop.f32.mrb[0].mxu0 }
  0xdc   :  { %v143_v17 = vadd.f32 %v315_v16, %v33_v14  ;;  %v123_v18 = vpop.f32.mrb[1].mxu0 }
  0xdd   :  { %v142_v19 = vadd.f32 %v123_v18, %v32_v15 }
  0xde   :  { %148 = vst.msk [vmem:[#allocation2 + $0x8] sm:$0xff] %vm27_vm1, %v143_v17 }
  0xdf   :  { %147 = vst.msk [vmem:[#allocation2] sm:$0xff] %vm27_vm1, %v142_v19  ;;  %v318_v23 = vpop.f32.mrb[2].mxu0 }
  0xe0   :  { %v145_v24 = vadd.f32 %v318_v23, %v35_v20  ;;  %v133_v25 = vpop.f32.mrb[3].mxu0 }
  0xe1   :  { %v144_v26 = vadd.f32 %v133_v25, %v34_v21 }
  0xe2   :  { %150 = vst.msk [vmem:[#allocation2 + $0x18] sm:$0xff] %vm27_vm1, %v145_v24 }
  0xe3   :  { %149 = vst.msk [vmem:[#allocation2 + $0x10] sm:$0xff] %vm27_vm1, %v144_v26 }
  0xe5   :  { %v155_v29 = vld [vmem:[#allocation2 + $0x8] sm:$0xff] }
  0xe6   :  { %v183_v30 = vadd.f32 %v170_v28, %v155_v29  ;;  %v154_v31 = vld [vmem:[#allocation2] sm:$0xff] }
  0xe7   :  { %v182_v32 = vadd.f32 %v165_v22, %v154_v31 }
  0xe8   :  { %v187_v33 = vmax.f32 %v183_v30, 0.0 }
  0xe9   :  { %v157_v35 = vld [vmem:[#allocation2 + $0x18] sm:$0xff]  ;;  %v186_v36 = vmax.f32 %v182_v32, 0.0 }
  0xea   :  { %v156_v37 = vld [vmem:[#allocation2 + $0x10] sm:$0xff]  ;;  %v185_v38 = vadd.f32 %v180_v34, %v157_v35 }
  0xeb   :  { %v184_v39 = vadd.f32 %v175_v27, %v156_v37  ;;  %v331_v40 = vpack.c.bf16 %v187_v33, %v186_v36 }
  0xec   :  { %v189_v41 = vmax.f32 %v185_v38, 0.0 }
  0xed   :  { %v188_v42 = vmax.f32 %v184_v39, 0.0  ;;  %332 = vmatpush3.bf16.msra.mxu1 %v331_v40 }
  0xee   :  { %333 = vmatprep.subr.bf16.mxu1 %v371_v13 }
  0xef   :  { %v334_v43 = vpack.c.bf16 %v189_v41, %v188_v42 }
  0xf1   :  { %335 = vmatpush3.bf16.msra.mxu1 %v334_v43 }
  0xf4   :  { %328 = vmatmul.mubr.msk.f32.vlgmr.msra.gmra.mrb[0].mxu1 %vm201_vm3, %v190_v44 }
 0x1c7   :  { %v271_v50 = vpop.f32.mrb[0].mxu1 }
 0x1c8   :  { %v272_v51 = vadd.f32 %v271_v50, %v200_v49  ;;  %v329_v52 = vpop.f32.mrb[1].mxu1 }
 0x1ca   :  { %v275_v53 = vmul.f32 0.5, %v272_v51 }
 0x1cc   :  { %343 = vtanh.f32 %v275_v53 }
 0x1d6   :  { %v344_v54 = vpop.eup %343 }
 0x1d7   :  { %v277_v55 = vmul.f32 0.5, %v344_v54 }
 0x1d9   :  { %v278_v56 = vadd.f32 0.5, %v277_v55 }
 0x1db   :  { %280 = vst.msk [vmem:[#allocation4] sm:$0x1] %vm279_vm4, %v278_v56 }
 0x1dc   :  { %356 = shalt.err (!%p353_p4)
}
 0x1dd   :  { %s357_s16 = scalar_lea.hbm %s468_s5, 16 }
 0x1de   :  { %p358_p5 = scmp.ne.s32.totalorder %s468_s5, %s357_s16  ;;  %p361_p6 = scmp.lt.u32.totalorder %s357_s16, %s468_s5 }
 0x1e0   :  { %p363_p7 = pnand %p361_p6, %p358_p5 }
 0x1e2   :  { %366 = shalt.err (!%p363_p7)
}
 0x1e3   :  { %290 = dma.vmem_to_hbm [thread:$0]  %s288_s12, 16, %s468_s5, [#allocation5]  }
 0x1e4   :  { %367 = dma.done.wait [#allocation5], 16  }
 0x1e5   :  { %368 = vsyncadd [#allocation5], 4294967280 }
 0x1e6   :  { %294 = vsyncpa [#allocation5], 1 }

</bundles_post_ra>
